<compile_context>
chip_gen: v6e
topology: v6e:2x2x1
jax: 0.10.0
libtpu: 0.0.40
codegen_flags: <defaults>
</compile_context>

<pallas_src>
import numpy as np
import jax
import jax.numpy as jnp
from jax.experimental import pallas as pl
from jax.experimental.pallas import tpu as pltpu


_OUT_DTYPE = jnp.bfloat16          # halves the dominant store stream
_MAX_LOGICAL_ROWS_PER_STEP = 8192  # ~0.5-2 MiB of output per grid step


def _round_up(a, b):
    return (a + b - 1) // b * b


# ---------------------------------------------------------------------------
# Pallas kernel: fused  y = (tanhshrink(x @ W1 + b1)) @ W2 + b2
# Tanhshrink(z) = z - tanh(z).  All refs are in the "packed"
# (row-group, P*feature) layout so stores are full-lane dense.
# ---------------------------------------------------------------------------
def _mlp_kernel(x_ref, w1_ref, b1_ref, w2_ref, b2_ref, o_ref):
    x = x_ref[...].astype(jnp.bfloat16)                      # (T, P*Din)
    h = jnp.dot(x, w1_ref[...], preferred_element_type=jnp.float32)
    h = h + b1_ref[...]                                      # (1, P*H) broadcast
    h = h - jnp.tanh(h)                                      # Tanhshrink (EUP)
    o = jnp.dot(h.astype(jnp.bfloat16), w2_ref[...],
                preferred_element_type=jnp.float32)
    o_ref[...] = (o + b2_ref[...]).astype(o_ref.dtype)       # bf16 dense store


# ---------------------------------------------------------------------------
# One-time weight packing (hoisted out of the jitted forward).
# P logical rows are packed per physical row so the output block is lane-dense
# (>=128 lanes); the weights become block-diagonal kron(I_P, W) which keeps the
# packed rows independent.  P == 1 once H >= 128.
# ---------------------------------------------------------------------------
def _pack_branch(w1, b1, w2, b2):
    din, H = w1.shape
    P = max(1, -(-128 // H))
    eye = jnp.eye(P, dtype=jnp.float32)
    return dict(
        w1p=jnp.kron(eye, w1.astype(jnp.float32)).astype(jnp.bfloat16),
        b1p=jnp.tile(b1.reshape(1, H).astype(jnp.float32), (1, P)),
        w2p=jnp.kron(eye, w2.astype(jnp.float32)).astype(jnp.bfloat16),
        b2p=jnp.tile(b2.reshape(1, H).astype(jnp.float32), (1, P)),
    )


def pack_fcn_tokenizer_params(params):
    """Precompute packed bf16 weights once; pass the result to the forward."""
    return dict(
        x=_pack_branch(params["x_w1"], params["x_b1"],
                       params["x_w2"], params["x_b2"]),
        y=_pack_branch(params["y_w1"], params["y_b1"],
                       params["y_w2"], params["y_b2"]),
        learnable_y=params["learnable_y"].astype(_OUT_DTYPE),
    )


# ---------------------------------------------------------------------------
# Tile selection: biggest tile under the row budget, multiple of 8 sublanes,
# and >=2 balanced (preferably even-count) blocks when the problem is big
# enough so v7x can shard the "parallel" axis over both TensorCores.
# ---------------------------------------------------------------------------
def _pick_tile(rows_packed, max_tile):
    if rows_packed <= 8:
        return rows_packed                     # single full-extent block
    n = max(2, pl.cdiv(rows_packed, max_tile))
    if n % 2:                                  # even block count -> balanced TCs
        n += 1
    return min(max_tile, _round_up(pl.cdiv(rows_packed, n), 8))


# ---------------------------------------------------------------------------
# Wrapper: fused 2-layer MLP over all rows of x2d ([R, Din] -> [R, H]).
# ---------------------------------------------------------------------------
def _fused_mlp(x2d, branch, *, max_rows_per_step=_MAX_LOGICAL_ROWS_PER_STEP,
               out_dtype=_OUT_DTYPE):
    R, din = x2d.shape
    w1p, b1p, w2p, b2p = branch["w1p"], branch["b1p"], branch["w2p"], branch["b2p"]
    P = w1p.shape[0] // din          # all static (derived from array shapes)
    Hp = w1p.shape[1]
    H = Hp // P

    Rp = _round_up(R, P)
    if Rp != R:
        # Only <= P-1 rows of Din floats; no pad at all for aligned row counts.
        x2d = jnp.pad(x2d, ((0, Rp - R), (0, 0)))
    rows_packed = Rp // P
    xp = x2d.reshape(rows_packed, P * din)     # free, contiguous view

    max_tile = max(8, _round_up(max(1, max_rows_per_step // P), 8))
    tile = _pick_tile(rows_packed, max_tile)
    grid = pl.cdiv(rows_packed, tile)

    in_bytes = np.dtype(x2d.dtype).itemsize
    out_bytes = np.dtype(out_dtype).itemsize
    cost = pl.CostEstimate(
        flops=2 * rows_packed * (P * din * Hp + Hp * Hp),
        transcendentals=rows_packed * Hp,
        bytes_accessed=(rows_packed * P * din * in_bytes     # x
                        + rows_packed * Hp * out_bytes        # output (bf16)
                        + (P * din * Hp + Hp * Hp) * 2        # bf16 weights
                        + 2 * Hp * 4),                        # biases
    )

    out = pl.pallas_call(
        _mlp_kernel,
        out_shape=jax.ShapeDtypeStruct((rows_packed, Hp), out_dtype),
        grid_spec=pltpu.PrefetchScalarGridSpec(
            num_scalar_prefetch=0,
            grid=(grid,),
            in_specs=[
                pl.BlockSpec((tile, P * din), lambda i: (i, 0)),  # x row-tile
                pl.BlockSpec((P * din, Hp), lambda i: (0, 0)),    # W1 (resident)
                pl.BlockSpec((1, Hp), lambda i: (0, 0)),          # b1
                pl.BlockSpec((Hp, Hp), lambda i: (0, 0)),         # W2 (resident)
                pl.BlockSpec((1, Hp), lambda i: (0, 0)),          # b2
            ],
            out_specs=pl.BlockSpec((tile, Hp), lambda i: (i, 0)),
        ),
        compiler_params=pltpu.CompilerParams(
            dimension_semantics=("parallel",)),
        cost_estimate=cost,
    )(xp, w1p, b1p, w2p, b2p)

    # Unpack (free reshape); the slice only trims the <=P-1 padded rows, if any.
    return out.reshape(Rp, H)[:R]


# ---------------------------------------------------------------------------
# Parameter construction (deterministic, PyTorch-Linear-style init shapes)
# ---------------------------------------------------------------------------
def init_fcn_tokenizer_params(key, d_model, n_x_dims, n_y_dims):
    h = d_model // 2
    ks = jax.random.split(key, 9)

    def linear(kw, kb, fan_in, fan_out):
        bound = 1.0 / jnp.sqrt(fan_in)
        w = jax.random.uniform(kw, (fan_in, fan_out), jnp.float32, -bound, bound)
        b = jax.random.uniform(kb, (fan_out,), jnp.float32, -bound, bound)
        return w, b

    params = {}
    params["x_w1"], params["x_b1"] = linear(ks[0], ks[1], n_x_dims, h)
    params["x_w2"], params["x_b2"] = linear(ks[2], ks[3], h, h)
    params["y_w1"], params["y_b1"] = linear(ks[4], ks[5], n_y_dims, h)
    params["y_w2"], params["y_b2"] = linear(ks[6], ks[7], h, h)
    params["learnable_y"] = jax.random.normal(ks[8], (1, 1, h), jnp.float32)
    return params


# ---------------------------------------------------------------------------
# Forward pass (matches FCNTokenizer.forward semantics; bf16 embeddings)
# ---------------------------------------------------------------------------
@jax.jit
def fcn_tokenizer_forward(packed, x_tensor, y_tensor):
    """
    packed:   output of pack_fcn_tokenizer_params (arrays only)
    x_tensor: [bs, sl, x_dim]    f32 or bf16
    y_tensor: [bs, sl-1, 1]      f32 or bf16
    returns (x_embed [bs, sl, d_model//2], y_embed [bs, sl, d_model//2])
    """
    bs, sl, x_dim = x_tensor.shape
    _, sl_y, y_dim = y_tensor.shape
    H = packed["learnable_y"].shape[-1]

    x_embed = _fused_mlp(x_tensor.reshape(bs * sl, x_dim),
                         packed["x"]).reshape(bs, sl, H)
    y_embed = _fused_mlp(y_tensor.reshape(bs * sl_y, y_dim),
                         packed["y"]).reshape(bs, sl_y, H)

    # concat learnable token along sequence axis (plain-JAX glue)
    learnable = jnp.broadcast_to(
        packed["learnable_y"].astype(y_embed.dtype), (bs, 1, H))
    y_embed = jnp.concatenate([y_embed, learnable], axis=1)
    return x_embed, y_embed


# ---------------------------------------------------------------------------
# Reference (pure JAX, f32) for sanity checking
# ---------------------------------------------------------------------------
def _ref_mlp(x, w1, b1, w2, b2):
    z = x @ w1 + b1
    z = z - jnp.tanh(z)
    return z @ w2 + b2


def _ref_forward(params, x_tensor, y_tensor):
    bs = x_tensor.shape[0]
    h = params["x_w1"].shape[1]
    x_embed = _ref_mlp(x_tensor, params["x_w1"], params["x_b1"],
                       params["x_w2"], params["x_b2"])
    y_embed = _ref_mlp(y_tensor, params["y_w1"], params["y_b1"],
                       params["y_w2"], params["y_b2"])
    learnable = jnp.broadcast_to(params["learnable_y"], (bs, 1, h))
    y_embed = jnp.concatenate([y_embed, learnable], axis=1)
    return x_embed, y_embed


if __name__ == "__main__":
    # d_model=64 -> hidden=32, 4 x-features, 1 y-feature.
    d_model = 64
    n_x_dims, n_y_dims = 4, 1

    key = jax.random.PRNGKey(0)
    k_params, k_x, k_y = jax.random.split(key, 3)
    params = init_fcn_tokenizer_params(k_params, d_model, n_x_dims, n_y_dims)
    packed = pack_fcn_tokenizer_params(params)   # hoisted: runs once, eagerly

    def run_case(bs, sl, kx, ky):
        x_tensor = jax.random.normal(kx, (bs, sl, n_x_dims), jnp.float32)
        y_tensor = jax.random.normal(ky, (bs, sl - 1, n_y_dims), jnp.float32)
        x_embed, y_embed = fcn_tokenizer_forward(packed, x_tensor, y_tensor)
        jax.block_until_ready((x_embed, y_embed))
        x_ref, y_ref = _ref_forward(params, x_tensor, y_tensor)
        assert x_embed.shape == (bs, sl, d_model // 2)
        assert y_embed.shape == (bs, sl, d_model // 2)
        # bf16 MXU inputs + bf16 output => bf16-appropriate tolerance vs f32 ref.
        assert jnp.allclose(x_embed.astype(jnp.float32), x_ref, atol=2e-2, rtol=2e-2)
        assert jnp.allclose(y_embed.astype(jnp.float32), y_ref, atol=2e-2, rtol=2e-2)

    # Small case (single-block grid): bs=4, sl=8.
    run_case(4, 8, *jax.random.split(k_x, 2))
    # Misaligned / multi-block case (exercises padding + 2-block parallel grid).
    run_case(2, 150, *jax.random.split(k_y, 2))

    print("KERNEL_OK")
</pallas_src>

<mosaic_0001>
module attributes {stable_mosaic.version = 11 : i64} {
  func.func @_mlp_kernel(%arg0: i32, %arg1: memref<8x16xf32, #tpu.memory_space<vmem>>, %arg2: memref<16x128xbf16, #tpu.memory_space<vmem>>, %arg3: memref<1x128xf32, #tpu.memory_space<vmem>>, %arg4: memref<128x128xbf16, #tpu.memory_space<vmem>>, %arg5: memref<1x128xf32, #tpu.memory_space<vmem>>, %arg6: memref<8x128xbf16, #tpu.memory_space<vmem>>) attributes {dimension_semantics = [#tpu.dimension_semantics<parallel>], iteration_bounds = array<i64: 1>, scalar_prefetch = 0 : i64, scratch_operands = 0 : i64, tpu.core_type = #tpu.core_type<tc>, window_params = [{transform_indices = @transform_0, window_bounds = array<i64: 8, 16>}, {pipeline_mode = #tpu.pipeline_mode<synchronous>, transform_indices = @transform_1, window_bounds = array<i64: 16, 128>}, {pipeline_mode = #tpu.pipeline_mode<synchronous>, transform_indices = @transform_2, window_bounds = array<i64: 1, 128>}, {pipeline_mode = #tpu.pipeline_mode<synchronous>, transform_indices = @transform_3, window_bounds = array<i64: 128, 128>}, {pipeline_mode = #tpu.pipeline_mode<synchronous>, transform_indices = @transform_4, window_bounds = array<i64: 1, 128>}, {transform_indices = @transform_5, window_bounds = array<i64: 8, 128>}]} {
    %c0 = arith.constant 0 : index
    %c0_0 = arith.constant 0 : index
    %0 = vector.load %arg1[%c0, %c0_0] : memref<8x16xf32, #tpu.memory_space<vmem>>, vector<8x16xf32>
    %1 = arith.truncf %0 : vector<8x16xf32> to vector<8x16xbf16>
    %c0_1 = arith.constant 0 : index
    %c0_2 = arith.constant 0 : index
    %2 = vector.load %arg2[%c0_1, %c0_2] : memref<16x128xbf16, #tpu.memory_space<vmem>>, vector<16x128xbf16>
    %cst = arith.constant dense<0.000000e+00> : vector<8x128xf32>
    %3 = tpu.matmul %1, %2, %cst {dimension_numbers = #tpu.dot_dimension_numbers<[1], [0], [0], [1], [0, 0, 1, 1], [], []>} : vector<8x16xbf16>, vector<16x128xbf16>, vector<8x128xf32> -> vector<8x128xf32>
    %c0_3 = arith.constant 0 : index
    %c0_4 = arith.constant 0 : index
    %4 = vector.load %arg3[%c0_3, %c0_4] : memref<1x128xf32, #tpu.memory_space<vmem>>, vector<1x128xf32>
    %5 = vector.broadcast %4 : vector<1x128xf32> to vector<8x128xf32>
    %6 = arith.addf %3, %5 : vector<8x128xf32>
    %7 = math.tanh %6 : vector<8x128xf32>
    %8 = arith.subf %6, %7 : vector<8x128xf32>
    %9 = arith.truncf %8 : vector<8x128xf32> to vector<8x128xbf16>
    %c0_5 = arith.constant 0 : index
    %c0_6 = arith.constant 0 : index
    %10 = vector.load %arg4[%c0_5, %c0_6] : memref<128x128xbf16, #tpu.memory_space<vmem>>, vector<128x128xbf16>
    %cst_7 = arith.constant dense<0.000000e+00> : vector<8x128xf32>
    %11 = tpu.matmul %9, %10, %cst_7 {dimension_numbers = #tpu.dot_dimension_numbers<[1], [0], [0], [1], [0, 0, 1, 1], [], []>} : vector<8x128xbf16>, vector<128x128xbf16>, vector<8x128xf32> -> vector<8x128xf32>
    %c0_8 = arith.constant 0 : index
    %c0_9 = arith.constant 0 : index
    %12 = vector.load %arg5[%c0_8, %c0_9] : memref<1x128xf32, #tpu.memory_space<vmem>>, vector<1x128xf32>
    %13 = vector.broadcast %12 : vector<1x128xf32> to vector<8x128xf32>
    %14 = arith.addf %11, %13 : vector<8x128xf32>
    %15 = arith.truncf %14 : vector<8x128xf32> to vector<8x128xbf16>
    %c0_10 = arith.constant 0 : index
    %c0_11 = arith.constant 0 : index
    %16 = vector.load %arg6[%c0_10, %c0_11] : memref<8x128xbf16, #tpu.memory_space<vmem>>, vector<8x128xbf16>
    tpu.vector_store %arg6[%c0_10, %c0_11], %15 {strides = array<i32>} : memref<8x128xbf16, #tpu.memory_space<vmem>>, vector<8x128xbf16>,
    return
  }
  func.func @transform_0(%arg0: i32) -> (i32, i32) {
    %c0_i32 = arith.constant 0 : i32
    %c0_i32_0 = arith.constant 0 : i32
    return %arg0, %c0_i32 : i32, i32
  }
  func.func @transform_1(%arg0: i32) -> (i32, i32) {
    %c0_i32 = arith.constant 0 : i32
    %c0_i32_0 = arith.constant 0 : i32
    %c0_i32_1 = arith.constant 0 : i32
    return %c0_i32, %c0_i32_0 : i32, i32
  }
  func.func @transform_2(%arg0: i32) -> (i32, i32) {
    %c0_i32 = arith.constant 0 : i32
    %c0_i32_0 = arith.constant 0 : i32
    %c0_i32_1 = arith.constant 0 : i32
    return %c0_i32, %c0_i32_0 : i32, i32
  }
  func.func @transform_3(%arg0: i32) -> (i32, i32) {
    %c0_i32 = arith.constant 0 : i32
    %c0_i32_0 = arith.constant 0 : i32
    %c0_i32_1 = arith.constant 0 : i32
    return %c0_i32, %c0_i32_0 : i32, i32
  }
  func.func @transform_4(%arg0: i32) -> (i32, i32) {
    %c0_i32 = arith.constant 0 : i32
    %c0_i32_0 = arith.constant 0 : i32
    %c0_i32_1 = arith.constant 0 : i32
    return %c0_i32, %c0_i32_0 : i32, i32
  }
  func.func @transform_5(%arg0: i32) -> (i32, i32) {
    %c0_i32 = arith.constant 0 : i32
    %c0_i32_0 = arith.constant 0 : i32
    return %arg0, %c0_i32 : i32, i32
  }
}

module attributes {stable_mosaic.version = 11 : i64} {
  func.func @_mlp_kernel(%arg0: i32, %arg1: memref<7x4xf32, #tpu.memory_space<vmem>>, %arg2: memref<4x128xbf16, #tpu.memory_space<vmem>>, %arg3: memref<1x128xf32, #tpu.memory_space<vmem>>, %arg4: memref<128x128xbf16, #tpu.memory_space<vmem>>, %arg5: memref<1x128xf32, #tpu.memory_space<vmem>>, %arg6: memref<7x128xbf16, #tpu.memory_space<vmem>>) attributes {dimension_semantics = [#tpu.dimension_semantics<parallel>], iteration_bounds = array<i64: 1>, scalar_prefetch = 0 : i64, scratch_operands = 0 : i64, tpu.core_type = #tpu.core_type<tc>, window_params = [{transform_indices = @transform_0, window_bounds = array<i64: 7, 4>}, {pipeline_mode = #tpu.pipeline_mode<synchronous>, transform_indices = @transform_1, window_bounds = array<i64: 4, 128>}, {pipeline_mode = #tpu.pipeline_mode<synchronous>, transform_indices = @transform_2, window_bounds = array<i64: 1, 128>}, {pipeline_mode = #tpu.pipeline_mode<synchronous>, transform_indices = @transform_3, window_bounds = array<i64: 128, 128>}, {pipeline_mode = #tpu.pipeline_mode<synchronous>, transform_indices = @transform_4, window_bounds = array<i64: 1, 128>}, {transform_indices = @transform_5, window_bounds = array<i64: 7, 128>}]} {
    %c0 = arith.constant 0 : index
    %c0_0 = arith.constant 0 : index
    %0 = vector.load %arg1[%c0, %c0_0] : memref<7x4xf32, #tpu.memory_space<vmem>>, vector<7x4xf32>
    %1 = arith.truncf %0 : vector<7x4xf32> to vector<7x4xbf16>
    %c0_1 = arith.constant 0 : index
    %c0_2 = arith.constant 0 : index
    %2 = vector.load %arg2[%c0_1, %c0_2] : memref<4x128xbf16, #tpu.memory_space<vmem>>, vector<4x128xbf16>
    %cst = arith.constant dense<0.000000e+00> : vector<7x128xf32>
    %3 = tpu.matmul %1, %2, %cst {dimension_numbers = #tpu.dot_dimension_numbers<[1], [0], [0], [1], [0, 0, 1, 1], [], []>} : vector<7x4xbf16>, vector<4x128xbf16>, vector<7x128xf32> -> vector<7x128xf32>
    %c0_3 = arith.constant 0 : index
    %c0_4 = arith.constant 0 : index
    %4 = vector.load %arg3[%c0_3, %c0_4] : memref<1x128xf32, #tpu.memory_space<vmem>>, vector<1x128xf32>
    %5 = vector.broadcast %4 : vector<1x128xf32> to vector<7x128xf32>
    %6 = arith.addf %3, %5 : vector<7x128xf32>
    %7 = math.tanh %6 : vector<7x128xf32>
    %8 = arith.subf %6, %7 : vector<7x128xf32>
    %9 = arith.truncf %8 : vector<7x128xf32> to vector<7x128xbf16>
    %c0_5 = arith.constant 0 : index
    %c0_6 = arith.constant 0 : index
    %10 = vector.load %arg4[%c0_5, %c0_6] : memref<128x128xbf16, #tpu.memory_space<vmem>>, vector<128x128xbf16>
    %cst_7 = arith.constant dense<0.000000e+00> : vector<7x128xf32>
    %11 = tpu.matmul %9, %10, %cst_7 {dimension_numbers = #tpu.dot_dimension_numbers<[1], [0], [0], [1], [0, 0, 1, 1], [], []>} : vector<7x128xbf16>, vector<128x128xbf16>, vector<7x128xf32> -> vector<7x128xf32>
    %c0_8 = arith.constant 0 : index
    %c0_9 = arith.constant 0 : index
    %12 = vector.load %arg5[%c0_8, %c0_9] : memref<1x128xf32, #tpu.memory_space<vmem>>, vector<1x128xf32>
    %13 = vector.broadcast %12 : vector<1x128xf32> to vector<7x128xf32>
    %14 = arith.addf %11, %13 : vector<7x128xf32>
    %15 = arith.truncf %14 : vector<7x128xf32> to vector<7x128xbf16>
    %c0_10 = arith.constant 0 : index
    %c0_11 = arith.constant 0 : index
    %16 = vector.load %arg6[%c0_10, %c0_11] : memref<7x128xbf16, #tpu.memory_space<vmem>>, vector<7x128xbf16>
    tpu.vector_store %arg6[%c0_10, %c0_11], %15 {strides = array<i32>} : memref<7x128xbf16, #tpu.memory_space<vmem>>, vector<7x128xbf16>,
    return
  }
  func.func @transform_0(%arg0: i32) -> (i32, i32) {
    %c0_i32 = arith.constant 0 : i32
    %c0_i32_0 = arith.constant 0 : i32
    return %arg0, %c0_i32 : i32, i32
  }
  func.func @transform_1(%arg0: i32) -> (i32, i32) {
    %c0_i32 = arith.constant 0 : i32
    %c0_i32_0 = arith.constant 0 : i32
    %c0_i32_1 = arith.constant 0 : i32
    return %c0_i32, %c0_i32_0 : i32, i32
  }
  func.func @transform_2(%arg0: i32) -> (i32, i32) {
    %c0_i32 = arith.constant 0 : i32
    %c0_i32_0 = arith.constant 0 : i32
    %c0_i32_1 = arith.constant 0 : i32
    return %c0_i32, %c0_i32_0 : i32, i32
  }
  func.func @transform_3(%arg0: i32) -> (i32, i32) {
    %c0_i32 = arith.constant 0 : i32
    %c0_i32_0 = arith.constant 0 : i32
    %c0_i32_1 = arith.constant 0 : i32
    return %c0_i32, %c0_i32_0 : i32, i32
  }
  func.func @transform_4(%arg0: i32) -> (i32, i32) {
    %c0_i32 = arith.constant 0 : i32
    %c0_i32_0 = arith.constant 0 : i32
    %c0_i32_1 = arith.constant 0 : i32
    return %c0_i32, %c0_i32_0 : i32, i32
  }
  func.func @transform_5(%arg0: i32) -> (i32, i32) {
    %c0_i32 = arith.constant 0 : i32
    %c0_i32_0 = arith.constant 0 : i32
    return %arg0, %c0_i32 : i32, i32
  }
}

</mosaic_0001>

<bundles_post_ra>
// kernel: fcn_tokenizer_forward.2
= control target key start
LH: loop header
LB: loop body
LE: loop exit
PB: predicated region body
PF: predicated region fallthrough
CT: control target
= control target key end

     0   :  { %v264_v0 = vmov 0.0   ;;  %vm265_vm0 = vmmov 0   ;;  %vm38_vm1 = vcmask 130048   ;;  %s335_s1 = inlined_call_operand.vmem [shape: bf16[16,128], index: 1, kind: input, shape index: {}]   ;;  %s336_s0 = inlined_call_operand.vmem [shape: f32[8,16], index: 0, kind: input, shape index: {}]   ;;  %s337_s3 = inlined_call_operand.vmem [shape: bf16[128,128], index: 3, kind: input, shape index: {}]   ;;  %s338_s2 = inlined_call_operand.vmem [shape: f32[1,128], index: 2, kind: input, shape index: {}]   ;;  %s339_s4 = inlined_call_operand.vmem [shape: f32[1,128], index: 4, kind: input, shape index: {}]   ;;  %s340_s5 = inlined_call_operand.vmem [shape: bf16[8,128], index: 5, kind: output, shape index: {}]  }
   0x1   :  { %225 = vmatprep.subr.bf16.mxu0 %v264_v0  ;;  %v253_v1 = vld [vmem:[%s335_s1] sm:$0xff]   ;;  %227 = vmatprep.mubr.msk.bf16.mxu0 %vm265_vm0, %v264_v0  ;;  %v254_v4 = vld [vmem:[%s337_s3 + $0x38] sm:$0xff]   ;;  %v255_v5 = vld [vmem:[%s337_s3 + $0x30] sm:$0xff]  }
   0x2   :  { %v21_v2 = vld [vmem:[%s336_s0] sm:$0xff]  ;;  %231 = vmatprep.subr.bf16.mxu1 %v264_v0  ;;  %247 = vmatprep.mubr.msk.bf16.mxu1 %vm265_vm0, %v264_v0  ;;  %v256_v6 = vld [vmem:[%s337_s3 + $0x28] sm:$0xff]   ;;  %v258_v8 = vld [vmem:[%s337_s3 + $0x18] sm:$0xff]  }
   0x3   :  { %226 = vmatpush3.bf16.msra.mxu0 %v253_v1  ;;  %v22_v3 = vpack.c.bf16 %v21_v2, %v21_v2  ;;  %232 = vmatpush3.bf16.msra.mxu1 %v254_v4  ;;  %v257_v7 = vld [vmem:[%s337_s3 + $0x20] sm:$0xff]   ;;  %v259_v9 = vld [vmem:[%s337_s3 + $0x10] sm:$0xff]   ;;  %v260_v10 = vld [vmem:[%s337_s3 + $0x8] sm:$0xff]  }
   0x4   :  { %233 = vmatprep.subr.bf16.mxu1 %v264_v0  ;;  %v261_v11 = vld [vmem:[%s337_s3] sm:$0xff]  }
   0x5   :  { %v202_v12 = vld [vmem:[%s338_s2] ss:$0 sm:$0xff] }
   0x6   :  { %228 = vmatmul.mubr.msk.bf16.vlgmr.msra.gmra.mxu0 %vm38_vm1, %v22_v3  ;;  %v205_v21 = vld [vmem:[%s339_s4] ss:$0 sm:$0xff] }
   0x7   :  { %234 = vmatpush3.bf16.msra.mxu1 %v255_v5 }
   0x8   :  { %235 = vmatprep.subr.bf16.mxu1 %v264_v0 }
   0xb   :  { %236 = vmatpush3.bf16.msra.mxu1 %v256_v6 }
   0xc   :  { %237 = vmatprep.subr.bf16.mxu1 %v264_v0 }
   0xf   :  { %238 = vmatpush3.bf16.msra.mxu1 %v257_v7 }
  0x10   :  { %239 = vmatprep.subr.bf16.mxu1 %v264_v0 }
  0x13   :  { %240 = vmatpush3.bf16.msra.mxu1 %v258_v8 }
  0x14   :  { %241 = vmatprep.subr.bf16.mxu1 %v264_v0 }
  0x17   :  { %242 = vmatpush3.bf16.msra.mxu1 %v259_v9 }
  0x18   :  { %243 = vmatprep.subr.bf16.mxu1 %v264_v0 }
  0x1b   :  { %244 = vmatpush3.bf16.msra.mxu1 %v260_v10 }
  0x1c   :  { %245 = vmatprep.subr.bf16.mxu1 %v264_v0 }
  0x1f   :  { %246 = vmatpush3.bf16.msra.mxu1 %v261_v11 }
  0xc6   :  { %v76_v13 = vpop.f32.mrf.mxu0 }
  0xc7   :  { %v77_v14 = vadd.f32 %v202_v12, %v76_v13 }
  0xc8   :  { %v229_v15 = vpop.f32.mrf.mxu0 }
  0xc9   :  { %262 = vtanh.f32 %v77_v14 }
  0xca   :  { %v79_v16 = vpop.f32.mrf.mxu0 }
  0xcc   :  { %v230_v17 = vpop.f32.mrf.mxu0 }
  0xd6   :  { %v263_v18 = vpop.eup %262 }
  0xd7   :  { %v83_v19 = vsub.f32 %v77_v14, %v263_v18 }
  0xd9   :  { %v84_v20 = vpack.c.bf16 %v83_v19, %v83_v19 }
  0xdb   :  { %248 = vmatmul.mubr.bf16.vlgmr.msra.gmra.mxu1 %v84_v20 }
 0x19b   :  { %v190_v22 = vpop.f32.mrf.mxu1 }
 0x19c   :  { %v191_v23 = vadd.f32 %v205_v21, %v190_v22 }
 0x19d   :  { %v249_v24 = vpop.f32.mrf.mxu1 }
 0x19e   :  { %v196_v25 = vpack.c.bf16 %v191_v23, %v191_v23 }
 0x19f   :  { %v193_v26 = vpop.f32.mrf.mxu1 }
 0x1a0   :  { %197 = vst [vmem:[%s340_s5] sm:$0xf] %v196_v25 }
 0x1a1   :  { %v250_v27 = vpop.f32.mrf.mxu1 }

// kernel: fcn_tokenizer_forward.3
= control target key start
LH: loop header
LB: loop body
LE: loop exit
PB: predicated region body
PF: predicated region fallthrough
CT: control target
= control target key end

     0   :  { %vm35_vm0 = vcmask 1041408   ;;  %v264_v0 = vmov 0.0   ;;  %vm265_vm1 = vmmov 0   ;;  %vm31_vm2 = vcmask 31744   ;;  %s338_s1 = inlined_call_operand.vmem [shape: bf16[4,128], index: 1, kind: input, shape index: {}]   ;;  %s339_s0 = inlined_call_operand.vmem [shape: f32[7,4], index: 0, kind: input, shape index: {}]   ;;  %s340_s3 = inlined_call_operand.vmem [shape: bf16[128,128], index: 3, kind: input, shape index: {}]   ;;  %s341_s2 = inlined_call_operand.vmem [shape: f32[1,128], index: 2, kind: input, shape index: {}]   ;;  %s342_s4 = inlined_call_operand.vmem [shape: f32[1,128], index: 4, kind: input, shape index: {}]   ;;  %s343_s5 = inlined_call_operand.vmem [shape: bf16[7,128], index: 5, kind: output, shape index: {}]  }
   0x1   :  { %226 = vmatprep.subr.bf16.mxu0 %v264_v0  ;;  %v23_v1 = vld [vmem:[%s338_s1] sm:$0x3]  ;;  %228 = vmatprep.mubr.msk.bf16.mxu0 %vm265_vm1, %v264_v0  ;;  %v254_v5 = vld [vmem:[%s340_s3 + $0x38] sm:$0xff]   ;;  %v255_v6 = vld [vmem:[%s340_s3 + $0x30] sm:$0xff]   ;;  %vm194_vm3 = vcmask 1043456  }
   0x2   :  { %v21_v2 = vld [vmem:[%s339_s0] sm:$0x7f]  ;;  %v37_v3 = vsel %vm35_vm0, %v23_v1, 0  ;;  %232 = vmatprep.subr.bf16.mxu1 %v264_v0  ;;  %248 = vmatprep.mubr.msk.bf16.mxu1 %vm265_vm1, %v264_v0  ;;  %v256_v7 = vld [vmem:[%s340_s3 + $0x28] sm:$0xff]   ;;  %v258_v9 = vld [vmem:[%s340_s3 + $0x18] sm:$0xff]  }
   0x3   :  { %v22_v4 = vpack.c.bf16 %v21_v2, %v21_v2  ;;  %227 = vmatpush3.bf16.msra.mxu0 %v37_v3  ;;  %233 = vmatpush3.bf16.msra.mxu1 %v254_v5  ;;  %v257_v8 = vld [vmem:[%s340_s3 + $0x20] sm:$0xff]   ;;  %v259_v10 = vld [vmem:[%s340_s3 + $0x10] sm:$0xff]   ;;  %v260_v11 = vld [vmem:[%s340_s3 + $0x8] sm:$0xff]   ;;  %vm195_vm4 = vsmask.f32 3328 }
   0x4   :  { %234 = vmatprep.subr.bf16.mxu1 %v264_v0  ;;  %v261_v12 = vld [vmem:[%s340_s3] sm:$0xff]   ;;  %vm196_vm5 = vmand %vm194_vm3, %vm195_vm4 }
   0x5   :  { %v204_v13 = vld [vmem:[%s341_s2] ss:$0 sm:$0xff] }
   0x6   :  { %229 = vmatmul.mubr.msk.bf16.vlgmr.msra.gmra.mxu0 %vm31_vm2, %v22_v4  ;;  %v206_v22 = vld [vmem:[%s342_s4] ss:$0 sm:$0xff] }
   0x7   :  { %235 = vmatpush3.bf16.msra.mxu1 %v255_v6  ;;  %v197_v25 = vld [vmem:[%s343_s5] sm:$0xf] }
   0x8   :  { %236 = vmatprep.subr.bf16.mxu1 %v264_v0 }
   0xb   :  { %237 = vmatpush3.bf16.msra.mxu1 %v256_v7 }
   0xc   :  { %238 = vmatprep.subr.bf16.mxu1 %v264_v0 }
   0xf   :  { %239 = vmatpush3.bf16.msra.mxu1 %v257_v8 }
  0x10   :  { %240 = vmatprep.subr.bf16.mxu1 %v264_v0 }
  0x13   :  { %241 = vmatpush3.bf16.msra.mxu1 %v258_v9 }
  0x14   :  { %242 = vmatprep.subr.bf16.mxu1 %v264_v0 }
  0x17   :  { %243 = vmatpush3.bf16.msra.mxu1 %v259_v10 }
  0x18   :  { %244 = vmatprep.subr.bf16.mxu1 %v264_v0 }
  0x1b   :  { %245 = vmatpush3.bf16.msra.mxu1 %v260_v11 }
  0x1c   :  { %246 = vmatprep.subr.bf16.mxu1 %v264_v0 }
  0x1f   :  { %247 = vmatpush3.bf16.msra.mxu1 %v261_v12 }
  0xc6   :  { %v73_v14 = vpop.f32.mrf.mxu0 }
  0xc7   :  { %v74_v15 = vadd.f32 %v204_v13, %v73_v14 }
  0xc8   :  { %v230_v16 = vpop.f32.mrf.mxu0 }
  0xc9   :  { %262 = vtanh.f32 %v74_v15 }
  0xca   :  { %v76_v17 = vpop.f32.mrf.mxu0 }
  0xcc   :  { %v231_v18 = vpop.f32.mrf.mxu0 }
  0xd6   :  { %v263_v19 = vpop.eup %262 }
  0xd7   :  { %v80_v20 = vsub.f32 %v74_v15, %v263_v19 }
  0xd9   :  { %v81_v21 = vpack.c.bf16 %v80_v20, %v80_v20 }
  0xdb   :  { %249 = vmatmul.mubr.bf16.vlgmr.msra.gmra.mxu1 %v81_v21 }
 0x19b   :  { %v187_v23 = vpop.f32.mrf.mxu1 }
 0x19c   :  { %v188_v24 = vadd.f32 %v206_v22, %v187_v23 }
 0x19d   :  { %v250_v26 = vpop.f32.mrf.mxu1 }
 0x19e   :  { %v193_v27 = vpack.c.bf16 %v188_v24, %v188_v24 }
 0x19f   :  { %v190_v28 = vpop.f32.mrf.mxu1 }
 0x1a0   :  { %v198_v29 = vsel %vm196_vm5, %v193_v27, %v197_v25 }
 0x1a1   :  { %199 = vst [vmem:[%s343_s5] sm:$0xf] %v198_v29  ;;  %v251_v30 = vpop.f32.mrf.mxu1 }

</bundles_post_ra>
